<compile_context>
chip_gen: v7x
topology: tpu7x:2x2x1
jax: 0.10.0
libtpu: 0.0.40
codegen_flags: <defaults>
</compile_context>

<pallas_src>
import jax
import jax.numpy as jnp
from jax.experimental import pallas as pl
from jax.experimental.pallas import tpu as pltpu


def _round_up(x, m):
    return (x + m - 1) // m * m


# ------------------------------- kernel -------------------------------------
def make_residual_mlp_kernel(d1_real, d2_real, d3_real, Dp1, Dp2, Dp3):
    """Fused ResidualMLP kernel. d*_real are un-padded dims, Dp* padded."""
    inv_d1 = 1.0 / float(d1_real)
    inv_d2 = 1.0 / float(d2_real)
    inv_d3 = 1.0 / float(d3_real)

    def layer_norm(x, ln_ref, inv_d):
        # Padded tail columns of x are exactly zero and gamma/beta are zero
        # there, so full-axis sums equal sums over the real dim; divide by the
        # real dim for the correct mean / (biased) variance.
        gamma = ln_ref[0:1, :]
        beta = ln_ref[1:2, :]
        s = jnp.sum(x, axis=-1, keepdims=True)
        ss = jnp.sum(x * x, axis=-1, keepdims=True)
        mu = s * inv_d
        var = ss * inv_d - mu * mu
        return (x - mu) * jax.lax.rsqrt(var + 1e-5) * gamma + beta

    def kernel(x_ref,
               Wcat1_ref, bias1_ref, ln1_ref,
               Wcat2_ref, bias2_ref, ln2_ref,
               Wcat3_ref, bias3_ref, ln3_ref,
               out_ref):
        x16 = x_ref[...]                                     # bf16 (TB, Dp_in)

        # --- fused [fc1 | res_fc1 | res_final](x) : one MXU dot, f32 accum ---
        y1 = jnp.dot(x16, Wcat1_ref[...],
                     preferred_element_type=jnp.float32) + bias1_ref[...]
        h_pre = y1[:, :Dp1]                 # fc1(x)
        r1 = y1[:, Dp1:2 * Dp1]             # res_fc1(x)
        r_final = y1[:, 2 * Dp1:]           # res_final(x)
        h = jnp.maximum(layer_norm(h_pre, ln1_ref, inv_d1), 0.0) + r1
        h16 = h.astype(jnp.bfloat16)

        # --- fused [fc2 | res_fc2](h) ---
        y2 = jnp.dot(h16, Wcat2_ref[...],
                     preferred_element_type=jnp.float32) + bias2_ref[...]
        h2 = jnp.maximum(layer_norm(y2[:, :Dp2], ln2_ref, inv_d2), 0.0) \
            + y2[:, Dp2:]
        h2_16 = h2.astype(jnp.bfloat16)

        # --- fused [fc3 | res_fc3](h2) ---
        y3 = jnp.dot(h2_16, Wcat3_ref[...],
                     preferred_element_type=jnp.float32) + bias3_ref[...]
        h3 = jnp.maximum(layer_norm(y3[:, :Dp3], ln3_ref, inv_d3), 0.0) \
            + y3[:, Dp3:]

        out_ref[...] = h3 + r_final

    return kernel


# ----------------------- one-time parameter preparation ---------------------
def prepare_params(params, input_dim, output_dim):
    """Pad to 128-lane multiples, fuse weights/biases, cast weights to bf16.

    Call once; reuse the result across forward calls (hoists ~20 pad/cast ops
    off the per-call critical path).
    """
    d1, d2, d3 = input_dim // 2, input_dim // 4, output_dim
    Dp_in = _round_up(input_dim, 128)
    Dp1, Dp2, Dp3 = (_round_up(d, 128) for d in (d1, d2, d3))

    def padw(w, rows, cols):
        w = jnp.asarray(w, jnp.float32)
        return jnp.pad(w, ((0, rows - w.shape[0]), (0, cols - w.shape[1])))

    def padv(v, cols):
        v = jnp.asarray(v, jnp.float32).reshape(1, -1)
        return jnp.pad(v, ((0, 0), (0, cols - v.shape[1])))

    p = params
    Wcat1 = jnp.concatenate(
        [padw(p["W1"], Dp_in, Dp1), padw(p["Wr1"], Dp_in, Dp1),
         padw(p["Wf"], Dp_in, Dp3)], axis=1).astype(jnp.bfloat16)
    bias1 = jnp.concatenate(
        [padv(p["b1"], Dp1), padv(p["br1"], Dp1), padv(p["bf"], Dp3)], axis=1)
    ln1 = jnp.concatenate([padv(p["g1"], Dp1), padv(p["be1"], Dp1)], axis=0)

    Wcat2 = jnp.concatenate(
        [padw(p["W2"], Dp1, Dp2), padw(p["Wr2"], Dp1, Dp2)],
        axis=1).astype(jnp.bfloat16)
    bias2 = jnp.concatenate([padv(p["b2"], Dp2), padv(p["br2"], Dp2)], axis=1)
    ln2 = jnp.concatenate([padv(p["g2"], Dp2), padv(p["be2"], Dp2)], axis=0)

    Wcat3 = jnp.concatenate(
        [padw(p["W3"], Dp2, Dp3), padw(p["Wr3"], Dp2, Dp3)],
        axis=1).astype(jnp.bfloat16)
    bias3 = jnp.concatenate([padv(p["b3"], Dp3), padv(p["br3"], Dp3)], axis=1)
    ln3 = jnp.concatenate([padv(p["g3"], Dp3), padv(p["be3"], Dp3)], axis=0)

    return {
        "arrays": (Wcat1, bias1, ln1, Wcat2, bias2, ln2, Wcat3, bias3, ln3),
        "dims": (d1, d2, d3, Dp_in, Dp1, Dp2, Dp3),
        "output_dim": output_dim,
    }


# --------------------------------- forward ----------------------------------
def residual_mlp_pallas(x, prepared, *, block_rows=512):
    """x: (B, input_dim) f32. prepared: output of prepare_params()."""
    d1, d2, d3, Dp_in, Dp1, Dp2, Dp3 = prepared["dims"]
    weights = prepared["arrays"]
    B, Din = x.shape
    assert Din <= Dp_in

    # Row tiling: multiple of 16 (bf16 sublane packing).  When the batch is
    # large enough, cap TB so the grid has >= 2 parallel steps (v7x megacore).
    B16 = _round_up(B, 16)
    TB = min(block_rows, B16)
    if B16 >= 32 and B16 // TB < 2:
        TB = _round_up(B16 // 2, 16)
    Bp = _round_up(B16, TB)

    # bf16 input: halves the per-step HBM DMA of the only streamed operand.
    xp = jnp.pad(x.astype(jnp.float32),
                 ((0, Bp - B), (0, Dp_in - Din))).astype(jnp.bfloat16)

    x_spec = pl.BlockSpec((TB, Dp_in), lambda i: (i, 0))
    out_spec = pl.BlockSpec((TB, Dp3), lambda i: (i, 0))

    def wspec(a):
        # Constant block index -> stays VMEM-resident across the grid;
        # Buffered(1) avoids double-buffering never-changing operands.
        return pl.BlockSpec(a.shape, lambda i: (0, 0),
                            pipeline_mode=pl.Buffered(1))

    kernel = make_residual_mlp_kernel(d1, d2, d3, Dp1, Dp2, Dp3)

    out_padded = pl.pallas_call(
        kernel,
        out_shape=jax.ShapeDtypeStruct((Bp, Dp3), jnp.float32),
        grid=(Bp // TB,),
        in_specs=[x_spec] + [wspec(a) for a in weights],
        out_specs=out_spec,
        compiler_params=pltpu.CompilerParams(
            dimension_semantics=("parallel",),      # megacore on v7x
            vmem_limit_bytes=48 * 1024 * 1024),     # fits v5e/v6e/v7x
    )(xp, *weights)

    return out_padded[:B, :prepared["output_dim"]]


# ---------------- pure-JAX reference (for correctness check) ----------------
def residual_mlp_ref(x, p):
    def ln(h, g, b):
        mu = h.mean(-1, keepdims=True)
        var = ((h - mu) ** 2).mean(-1, keepdims=True)
        return (h - mu) / jnp.sqrt(var + 1e-5) * g + b

    r_final = x @ p["Wf"] + p["bf"]
    h = jax.nn.relu(ln(x @ p["W1"] + p["b1"], p["g1"], p["be1"]))
    h = h + x @ p["Wr1"] + p["br1"]
    h2 = jax.nn.relu(ln(h @ p["W2"] + p["b2"], p["g2"], p["be2"]))
    h2 = h2 + h @ p["Wr2"] + p["br2"]
    h3 = jax.nn.relu(ln(h2 @ p["W3"] + p["b3"], p["g3"], p["be3"]))
    h3 = h3 + h2 @ p["Wr3"] + p["br3"]
    return h3 + r_final


def init_params(key, input_dim, output_dim):
    d1, d2, d3 = input_dim // 2, input_dim // 4, output_dim
    ks = jax.random.split(key, 16)
    w = lambda k, i, o: jax.random.normal(k, (i, o), jnp.float32) * 0.1
    b = lambda k, o: jax.random.normal(k, (o,), jnp.float32) * 0.05
    return {
        "W1": w(ks[0], input_dim, d1), "b1": b(ks[1], d1),
        "g1": jnp.ones((d1,), jnp.float32), "be1": jnp.zeros((d1,), jnp.float32),
        "Wr1": w(ks[2], input_dim, d1), "br1": b(ks[3], d1),

        "W2": w(ks[4], d1, d2), "b2": b(ks[5], d2),
        "g2": jnp.ones((d2,), jnp.float32), "be2": jnp.zeros((d2,), jnp.float32),
        "Wr2": w(ks[6], d1, d2), "br2": b(ks[7], d2),

        "W3": w(ks[8], d2, d3), "b3": b(ks[9], d3),
        "g3": jnp.ones((d3,), jnp.float32), "be3": jnp.zeros((d3,), jnp.float32),
        "Wr3": w(ks[10], d2, d3), "br3": b(ks[11], d3),

        "Wf": w(ks[12], input_dim, d3), "bf": b(ks[13], d3),
    }


if __name__ == "__main__":
    input_dim, output_dim, batch = 256, 32, 16

    key = jax.random.PRNGKey(0)
    k_x, k_p = jax.random.split(key, 2)
    x = jax.random.normal(k_x, (batch, input_dim), jnp.float32)
    params = init_params(k_p, input_dim, output_dim)

    prepared = prepare_params(params, input_dim, output_dim)   # one-time cost
    out = residual_mlp_pallas(x, prepared)
    jax.block_until_ready(out)

    ref = residual_mlp_ref(x, params)
    rel_err = jnp.linalg.norm(out - ref) / jnp.maximum(jnp.linalg.norm(ref), 1e-6)
    assert out.shape == (batch, output_dim), f"bad output shape {out.shape}"
    assert float(rel_err) < 3e-2, f"mismatch, rel_err={float(rel_err)}"

    print("KERNEL_OK")
</pallas_src>

<mosaic_0001>
module attributes {stable_mosaic.version = 11 : i64} {
  func.func @kernel(%arg0: i32, %arg1: memref<16x256xbf16, #tpu.memory_space<vmem>>, %arg2: memref<256x384xbf16, #tpu.memory_space<vmem>>, %arg3: memref<1x384xf32, #tpu.memory_space<vmem>>, %arg4: memref<2x128xf32, #tpu.memory_space<vmem>>, %arg5: memref<128x256xbf16, #tpu.memory_space<vmem>>, %arg6: memref<1x256xf32, #tpu.memory_space<vmem>>, %arg7: memref<2x128xf32, #tpu.memory_space<vmem>>, %arg8: memref<128x256xbf16, #tpu.memory_space<vmem>>, %arg9: memref<1x256xf32, #tpu.memory_space<vmem>>, %arg10: memref<2x128xf32, #tpu.memory_space<vmem>>, %arg11: memref<16x128xf32, #tpu.memory_space<vmem>>) attributes {dimension_semantics = [#tpu.dimension_semantics<parallel>], iteration_bounds = array<i64: 1>, scalar_prefetch = 0 : i64, scratch_operands = 0 : i64, tpu.core_type = #tpu.core_type<tc>, window_params = [{transform_indices = @transform_0, window_bounds = array<i64: 16, 256>}, {pipeline_mode = #tpu.pipeline_mode<synchronous>, transform_indices = @transform_1, window_bounds = array<i64: 256, 384>}, {pipeline_mode = #tpu.pipeline_mode<synchronous>, transform_indices = @transform_2, window_bounds = array<i64: 1, 384>}, {pipeline_mode = #tpu.pipeline_mode<synchronous>, transform_indices = @transform_3, window_bounds = array<i64: 2, 128>}, {pipeline_mode = #tpu.pipeline_mode<synchronous>, transform_indices = @transform_4, window_bounds = array<i64: 128, 256>}, {pipeline_mode = #tpu.pipeline_mode<synchronous>, transform_indices = @transform_5, window_bounds = array<i64: 1, 256>}, {pipeline_mode = #tpu.pipeline_mode<synchronous>, transform_indices = @transform_6, window_bounds = array<i64: 2, 128>}, {pipeline_mode = #tpu.pipeline_mode<synchronous>, transform_indices = @transform_7, window_bounds = array<i64: 128, 256>}, {pipeline_mode = #tpu.pipeline_mode<synchronous>, transform_indices = @transform_8, window_bounds = array<i64: 1, 256>}, {pipeline_mode = #tpu.pipeline_mode<synchronous>, transform_indices = @transform_9, window_bounds = array<i64: 2, 128>}, {transform_indices = @transform_10, window_bounds = array<i64: 16, 128>}]} {
    %c0 = arith.constant 0 : index
    %c0_0 = arith.constant 0 : index
    %0 = vector.load %arg1[%c0, %c0_0] : memref<16x256xbf16, #tpu.memory_space<vmem>>, vector<16x256xbf16>
    %c0_1 = arith.constant 0 : index
    %c0_2 = arith.constant 0 : index
    %1 = vector.load %arg2[%c0_1, %c0_2] : memref<256x384xbf16, #tpu.memory_space<vmem>>, vector<256x384xbf16>
    %cst = arith.constant dense<0.000000e+00> : vector<16x384xf32>
    %2 = tpu.matmul %0, %1, %cst {dimension_numbers = #tpu.dot_dimension_numbers<[1], [0], [0], [1], [0, 0, 1, 1], [], []>} : vector<16x256xbf16>, vector<256x384xbf16>, vector<16x384xf32> -> vector<16x384xf32>
    %c0_3 = arith.constant 0 : index
    %c0_4 = arith.constant 0 : index
    %3 = vector.load %arg3[%c0_3, %c0_4] : memref<1x384xf32, #tpu.memory_space<vmem>>, vector<1x384xf32>
    %4 = vector.broadcast %3 : vector<1x384xf32> to vector<16x384xf32>
    %5 = arith.addf %2, %4 : vector<16x384xf32>
    %6 = vector.extract_strided_slice %5 {offsets = [0, 0], sizes = [16, 128], strides = [1, 1]} : vector<16x384xf32> to vector<16x128xf32>
    %7 = vector.extract_strided_slice %5 {offsets = [0, 128], sizes = [16, 128], strides = [1, 1]} : vector<16x384xf32> to vector<16x128xf32>
    %8 = vector.extract_strided_slice %5 {offsets = [0, 256], sizes = [16, 128], strides = [1, 1]} : vector<16x384xf32> to vector<16x128xf32>
    %c0_5 = arith.constant 0 : index
    %c0_6 = arith.constant 0 : index
    %9 = vector.load %arg4[%c0_5, %c0_6] : memref<2x128xf32, #tpu.memory_space<vmem>>, vector<1x128xf32>
    %c1 = arith.constant 1 : index
    %c0_7 = arith.constant 0 : index
    %10 = vector.load %arg4[%c1, %c0_7] : memref<2x128xf32, #tpu.memory_space<vmem>>, vector<1x128xf32>
    %cst_8 = arith.constant dense<0.000000e+00> : vector<16xf32>
    %11 = vector.multi_reduction <add>, %6, %cst_8 [1] : vector<16x128xf32> to vector<16xf32>
    %12 = vector.shape_cast %11 : vector<16xf32> to vector<16x1xf32>
    %13 = arith.mulf %6, %6 : vector<16x128xf32>
    %cst_9 = arith.constant dense<0.000000e+00> : vector<16xf32>
    %14 = vector.multi_reduction <add>, %13, %cst_9 [1] : vector<16x128xf32> to vector<16xf32>
    %15 = vector.shape_cast %14 : vector<16xf32> to vector<16x1xf32>
    %cst_10 = arith.constant 7.812500e-03 : f32
    %16 = vector.broadcast %cst_10 : f32 to vector<16x1xf32>
    %17 = arith.mulf %12, %16 : vector<16x1xf32>
    %cst_11 = arith.constant 7.812500e-03 : f32
    %18 = vector.broadcast %cst_11 : f32 to vector<16x1xf32>
    %19 = arith.mulf %15, %18 : vector<16x1xf32>
    %20 = arith.mulf %17, %17 : vector<16x1xf32>
    %21 = arith.subf %19, %20 : vector<16x1xf32>
    %22 = vector.broadcast %17 : vector<16x1xf32> to vector<16x128xf32>
    %23 = arith.subf %6, %22 : vector<16x128xf32>
    %cst_12 = arith.constant 9.99999974E-6 : f32
    %24 = vector.broadcast %cst_12 : f32 to vector<16x1xf32>
    %25 = arith.addf %21, %24 : vector<16x1xf32>
    %26 = math.rsqrt %25 : vector<16x1xf32>
    %27 = vector.broadcast %26 : vector<16x1xf32> to vector<16x128xf32>
    %28 = arith.mulf %23, %27 : vector<16x128xf32>
    %29 = vector.broadcast %9 : vector<1x128xf32> to vector<16x128xf32>
    %30 = arith.mulf %28, %29 : vector<16x128xf32>
    %31 = vector.broadcast %10 : vector<1x128xf32> to vector<16x128xf32>
    %32 = arith.addf %30, %31 : vector<16x128xf32>
    %cst_13 = arith.constant 0.000000e+00 : f32
    %33 = vector.broadcast %cst_13 : f32 to vector<16x128xf32>
    %34 = arith.maximumf %32, %33 : vector<16x128xf32>
    %35 = arith.addf %34, %7 : vector<16x128xf32>
    %36 = arith.truncf %35 : vector<16x128xf32> to vector<16x128xbf16>
    %c0_14 = arith.constant 0 : index
    %c0_15 = arith.constant 0 : index
    %37 = vector.load %arg5[%c0_14, %c0_15] : memref<128x256xbf16, #tpu.memory_space<vmem>>, vector<128x256xbf16>
    %cst_16 = arith.constant dense<0.000000e+00> : vector<16x256xf32>
    %38 = tpu.matmul %36, %37, %cst_16 {dimension_numbers = #tpu.dot_dimension_numbers<[1], [0], [0], [1], [0, 0, 1, 1], [], []>} : vector<16x128xbf16>, vector<128x256xbf16>, vector<16x256xf32> -> vector<16x256xf32>
    %c0_17 = arith.constant 0 : index
    %c0_18 = arith.constant 0 : index
    %39 = vector.load %arg6[%c0_17, %c0_18] : memref<1x256xf32, #tpu.memory_space<vmem>>, vector<1x256xf32>
    %40 = vector.broadcast %39 : vector<1x256xf32> to vector<16x256xf32>
    %41 = arith.addf %38, %40 : vector<16x256xf32>
    %42 = vector.extract_strided_slice %41 {offsets = [0, 0], sizes = [16, 128], strides = [1, 1]} : vector<16x256xf32> to vector<16x128xf32>
    %c0_19 = arith.constant 0 : index
    %c0_20 = arith.constant 0 : index
    %43 = vector.load %arg7[%c0_19, %c0_20] : memref<2x128xf32, #tpu.memory_space<vmem>>, vector<1x128xf32>
    %c1_21 = arith.constant 1 : index
    %c0_22 = arith.constant 0 : index
    %44 = vector.load %arg7[%c1_21, %c0_22] : memref<2x128xf32, #tpu.memory_space<vmem>>, vector<1x128xf32>
    %cst_23 = arith.constant dense<0.000000e+00> : vector<16xf32>
    %45 = vector.multi_reduction <add>, %42, %cst_23 [1] : vector<16x128xf32> to vector<16xf32>
    %46 = vector.shape_cast %45 : vector<16xf32> to vector<16x1xf32>
    %47 = arith.mulf %42, %42 : vector<16x128xf32>
    %cst_24 = arith.constant dense<0.000000e+00> : vector<16xf32>
    %48 = vector.multi_reduction <add>, %47, %cst_24 [1] : vector<16x128xf32> to vector<16xf32>
    %49 = vector.shape_cast %48 : vector<16xf32> to vector<16x1xf32>
    %cst_25 = arith.constant 1.562500e-02 : f32
    %50 = vector.broadcast %cst_25 : f32 to vector<16x1xf32>
    %51 = arith.mulf %46, %50 : vector<16x1xf32>
    %cst_26 = arith.constant 1.562500e-02 : f32
    %52 = vector.broadcast %cst_26 : f32 to vector<16x1xf32>
    %53 = arith.mulf %49, %52 : vector<16x1xf32>
    %54 = arith.mulf %51, %51 : vector<16x1xf32>
    %55 = arith.subf %53, %54 : vector<16x1xf32>
    %56 = vector.broadcast %51 : vector<16x1xf32> to vector<16x128xf32>
    %57 = arith.subf %42, %56 : vector<16x128xf32>
    %cst_27 = arith.constant 9.99999974E-6 : f32
    %58 = vector.broadcast %cst_27 : f32 to vector<16x1xf32>
    %59 = arith.addf %55, %58 : vector<16x1xf32>
    %60 = math.rsqrt %59 : vector<16x1xf32>
    %61 = vector.broadcast %60 : vector<16x1xf32> to vector<16x128xf32>
    %62 = arith.mulf %57, %61 : vector<16x128xf32>
    %63 = vector.broadcast %43 : vector<1x128xf32> to vector<16x128xf32>
    %64 = arith.mulf %62, %63 : vector<16x128xf32>
    %65 = vector.broadcast %44 : vector<1x128xf32> to vector<16x128xf32>
    %66 = arith.addf %64, %65 : vector<16x128xf32>
    %cst_28 = arith.constant 0.000000e+00 : f32
    %67 = vector.broadcast %cst_28 : f32 to vector<16x128xf32>
    %68 = arith.maximumf %66, %67 : vector<16x128xf32>
    %69 = vector.extract_strided_slice %41 {offsets = [0, 128], sizes = [16, 128], strides = [1, 1]} : vector<16x256xf32> to vector<16x128xf32>
    %70 = arith.addf %68, %69 : vector<16x128xf32>
    %71 = arith.truncf %70 : vector<16x128xf32> to vector<16x128xbf16>
    %c0_29 = arith.constant 0 : index
    %c0_30 = arith.constant 0 : index
    %72 = vector.load %arg8[%c0_29, %c0_30] : memref<128x256xbf16, #tpu.memory_space<vmem>>, vector<128x256xbf16>
    %cst_31 = arith.constant dense<0.000000e+00> : vector<16x256xf32>
    %73 = tpu.matmul %71, %72, %cst_31 {dimension_numbers = #tpu.dot_dimension_numbers<[1], [0], [0], [1], [0, 0, 1, 1], [], []>} : vector<16x128xbf16>, vector<128x256xbf16>, vector<16x256xf32> -> vector<16x256xf32>
    %c0_32 = arith.constant 0 : index
    %c0_33 = arith.constant 0 : index
    %74 = vector.load %arg9[%c0_32, %c0_33] : memref<1x256xf32, #tpu.memory_space<vmem>>, vector<1x256xf32>
    %75 = vector.broadcast %74 : vector<1x256xf32> to vector<16x256xf32>
    %76 = arith.addf %73, %75 : vector<16x256xf32>
    %77 = vector.extract_strided_slice %76 {offsets = [0, 0], sizes = [16, 128], strides = [1, 1]} : vector<16x256xf32> to vector<16x128xf32>
    %c0_34 = arith.constant 0 : index
    %c0_35 = arith.constant 0 : index
    %78 = vector.load %arg10[%c0_34, %c0_35] : memref<2x128xf32, #tpu.memory_space<vmem>>, vector<1x128xf32>
    %c1_36 = arith.constant 1 : index
    %c0_37 = arith.constant 0 : index
    %79 = vector.load %arg10[%c1_36, %c0_37] : memref<2x128xf32, #tpu.memory_space<vmem>>, vector<1x128xf32>
    %cst_38 = arith.constant dense<0.000000e+00> : vector<16xf32>
    %80 = vector.multi_reduction <add>, %77, %cst_38 [1] : vector<16x128xf32> to vector<16xf32>
    %81 = vector.shape_cast %80 : vector<16xf32> to vector<16x1xf32>
    %82 = arith.mulf %77, %77 : vector<16x128xf32>
    %cst_39 = arith.constant dense<0.000000e+00> : vector<16xf32>
    %83 = vector.multi_reduction <add>, %82, %cst_39 [1] : vector<16x128xf32> to vector<16xf32>
    %84 = vector.shape_cast %83 : vector<16xf32> to vector<16x1xf32>
    %cst_40 = arith.constant 3.125000e-02 : f32
    %85 = vector.broadcast %cst_40 : f32 to vector<16x1xf32>
    %86 = arith.mulf %81, %85 : vector<16x1xf32>
    %cst_41 = arith.constant 3.125000e-02 : f32
    %87 = vector.broadcast %cst_41 : f32 to vector<16x1xf32>
    %88 = arith.mulf %84, %87 : vector<16x1xf32>
    %89 = arith.mulf %86, %86 : vector<16x1xf32>
    %90 = arith.subf %88, %89 : vector<16x1xf32>
    %91 = vector.broadcast %86 : vector<16x1xf32> to vector<16x128xf32>
    %92 = arith.subf %77, %91 : vector<16x128xf32>
    %cst_42 = arith.constant 9.99999974E-6 : f32
    %93 = vector.broadcast %cst_42 : f32 to vector<16x1xf32>
    %94 = arith.addf %90, %93 : vector<16x1xf32>
    %95 = math.rsqrt %94 : vector<16x1xf32>
    %96 = vector.broadcast %95 : vector<16x1xf32> to vector<16x128xf32>
    %97 = arith.mulf %92, %96 : vector<16x128xf32>
    %98 = vector.broadcast %78 : vector<1x128xf32> to vector<16x128xf32>
    %99 = arith.mulf %97, %98 : vector<16x128xf32>
    %100 = vector.broadcast %79 : vector<1x128xf32> to vector<16x128xf32>
    %101 = arith.addf %99, %100 : vector<16x128xf32>
    %cst_43 = arith.constant 0.000000e+00 : f32
    %102 = vector.broadcast %cst_43 : f32 to vector<16x128xf32>
    %103 = arith.maximumf %101, %102 : vector<16x128xf32>
    %104 = vector.extract_strided_slice %76 {offsets = [0, 128], sizes = [16, 128], strides = [1, 1]} : vector<16x256xf32> to vector<16x128xf32>
    %105 = arith.addf %103, %104 : vector<16x128xf32>
    %106 = arith.addf %105, %8 : vector<16x128xf32>
    %c0_44 = arith.constant 0 : index
    %c0_45 = arith.constant 0 : index
    %107 = vector.load %arg11[%c0_44, %c0_45] : memref<16x128xf32, #tpu.memory_space<vmem>>, vector<16x128xf32>
    tpu.vector_store %arg11[%c0_44, %c0_45], %106 {strides = array<i32>} : memref<16x128xf32, #tpu.memory_space<vmem>>, vector<16x128xf32>,
    return
  }
  func.func @transform_0(%arg0: i32) -> (i32, i32) {
    %c0_i32 = arith.constant 0 : i32
    %c0_i32_0 = arith.constant 0 : i32
    return %arg0, %c0_i32 : i32, i32
  }
  func.func @transform_1(%arg0: i32) -> (i32, i32) {
    %c0_i32 = arith.constant 0 : i32
    %c0_i32_0 = arith.constant 0 : i32
    %c0_i32_1 = arith.constant 0 : i32
    return %c0_i32, %c0_i32_0 : i32, i32
  }
  func.func @transform_2(%arg0: i32) -> (i32, i32) {
    %c0_i32 = arith.constant 0 : i32
    %c0_i32_0 = arith.constant 0 : i32
    %c0_i32_1 = arith.constant 0 : i32
    return %c0_i32, %c0_i32_0 : i32, i32
  }
  func.func @transform_3(%arg0: i32) -> (i32, i32) {
    %c0_i32 = arith.constant 0 : i32
    %c0_i32_0 = arith.constant 0 : i32
    %c0_i32_1 = arith.constant 0 : i32
    return %c0_i32, %c0_i32_0 : i32, i32
  }
  func.func @transform_4(%arg0: i32) -> (i32, i32) {
    %c0_i32 = arith.constant 0 : i32
    %c0_i32_0 = arith.constant 0 : i32
    %c0_i32_1 = arith.constant 0 : i32
    return %c0_i32, %c0_i32_0 : i32, i32
  }
  func.func @transform_5(%arg0: i32) -> (i32, i32) {
    %c0_i32 = arith.constant 0 : i32
    %c0_i32_0 = arith.constant 0 : i32
    %c0_i32_1 = arith.constant 0 : i32
    return %c0_i32, %c0_i32_0 : i32, i32
  }
  func.func @transform_6(%arg0: i32) -> (i32, i32) {
    %c0_i32 = arith.constant 0 : i32
    %c0_i32_0 = arith.constant 0 : i32
    %c0_i32_1 = arith.constant 0 : i32
    return %c0_i32, %c0_i32_0 : i32, i32
  }
  func.func @transform_7(%arg0: i32) -> (i32, i32) {
    %c0_i32 = arith.constant 0 : i32
    %c0_i32_0 = arith.constant 0 : i32
    %c0_i32_1 = arith.constant 0 : i32
    return %c0_i32, %c0_i32_0 : i32, i32
  }
  func.func @transform_8(%arg0: i32) -> (i32, i32) {
    %c0_i32 = arith.constant 0 : i32
    %c0_i32_0 = arith.constant 0 : i32
    %c0_i32_1 = arith.constant 0 : i32
    return %c0_i32, %c0_i32_0 : i32, i32
  }
  func.func @transform_9(%arg0: i32) -> (i32, i32) {
    %c0_i32 = arith.constant 0 : i32
    %c0_i32_0 = arith.constant 0 : i32
    %c0_i32_1 = arith.constant 0 : i32
    return %c0_i32, %c0_i32_0 : i32, i32
  }
  func.func @transform_10(%arg0: i32) -> (i32, i32) {
    %c0_i32 = arith.constant 0 : i32
    %c0_i32_0 = arith.constant 0 : i32
    return %arg0, %c0_i32 : i32, i32
  }
}

</mosaic_0001>

<bundles_post_ra>
// kernel: tpu_custom_call.1
= control target key start
LH: loop header
LB: loop body
LE: loop exit
PB: predicated region body
PF: predicated region fallthrough
CT: control target
= control target key end

     0   :  { %15 = vsyncpa [#allocation3], 0  ;;  %s1586_s0 = inlined_call_operand.hbm [shape: bf16[16,256], index: 0, kind: input, shape index: {}]   ;;  %s1587_s1 = inlined_call_operand.hbm [shape: bf16[256,384], index: 1, kind: input, shape index: {}]   ;;  %s1588_s2 = inlined_call_operand.vmem [shape: f32[1,384], index: 2, kind: input, shape index: {}]   ;;  %s1589_s3 = inlined_call_operand.vmem [shape: f32[2,128], index: 3, kind: input, shape index: {}]   ;;  %s1590_s4 = inlined_call_operand.hbm [shape: bf16[128,256], index: 4, kind: input, shape index: {}]   ;;  %s1591_s5 = inlined_call_operand.vmem [shape: f32[1,256], index: 5, kind: input, shape index: {}]   ;;  %s1592_s6 = inlined_call_operand.vmem [shape: f32[2,128], index: 6, kind: input, shape index: {}]   ;;  %s1593_s7 = inlined_call_operand.hbm [shape: bf16[128,256], index: 7, kind: input, shape index: {}]   ;;  %s1594_s8 = inlined_call_operand.vmem [shape: f32[1,256], index: 8, kind: input, shape index: {}]   ;;  %s1595_s9 = inlined_call_operand.vmem [shape: f32[2,128], index: 9, kind: input, shape index: {}]   ;;  %s1596_s10 = inlined_call_operand.hbm [shape: f32[16,128], index: 10, kind: output, shape index: {}]  }
   0x1   :  { %16 = vsyncpa [#allocation6], 0 }
   0x2   :  { %17 = vsyncpa [#allocation9], 0 }
   0x3   :  { %18 = vsyncpa [#allocation4], 0  ;;  %s1349_s13 = smov [#allocation5]   ;;  %s1231_s17 = scalar_lea.hbm %s1587_s1, 6144 }
   0x4   :  { %s36_s14 = sshll.u32 %s1349_s13, 4  ;;  %p1232_p0 = scmp.ne.s32.totalorder %s1587_s1, %s1231_s17  ;;  %s37_s14 = int_to_ptr.vmem [resolvable:$true] %s36_s14 }
   0x5   :  { %p1235_p1 = scmp.lt.u32.totalorder %s1231_s17, %s1587_s1 }
   0x7   :  { %p1237_p2 = pnand %p1235_p1, %p1232_p0 }
   0x9   :  { %1240 = shalt.err (!%p1237_p2)
}
   0xa   :  { %s1241_s22 = scalar_lea.vmem %s37_s14, 6144  ;;  %p1246_p4 = scmp.lt.s32.totalorder %s37_s14, %s37_s14 }
   0xb   :  { %p1242_p3 = scmp.ne.s32.totalorder %s37_s14, %s1241_s22  ;;  %p1247_p5 = scmp.lt.s32.totalorder %s1241_s22, %s1241_s22 }
   0xd   :  { %p1248_p6 = por %p1247_p5, %p1246_p4 }
   0xf   :  { %p1249_p7 = pnand %p1248_p6, %p1242_p3 }
  0x11   :  { %1252 = shalt.err (!%p1249_p7)
}
  0x12   :  { %s1350_s23 = smov 192   ;;  %s1351_s24 = smov 12  }
  0x13   :  { %42 = dma.hbm_to_vmem [thread:$0]  %s1587_s1, 6144, %s37_s14, [#allocation6], %s1350_s23, %s1350_s23, %s1351_s24  }
  0x14   :  { %s1352_s27 = smov [#allocation2]   ;;  %s1253_s11 = scalar_lea.hbm %s1586_s0, 256 }
  0x15   :  { %s24_s28 = sshll.u32 %s1352_s27, 4  ;;  %p1254_p8 = scmp.ne.s32.totalorder %s1586_s0, %s1253_s11  ;;  %s25_s28 = int_to_ptr.vmem [resolvable:$true] %s24_s28 }
  0x16   :  { %p1257_p9 = scmp.lt.u32.totalorder %s1253_s11, %s1586_s0 }
  0x18   :  { %p1259_p10 = pnand %p1257_p9, %p1254_p8 }
  0x1a   :  { %1262 = shalt.err (!%p1259_p10)
}
  0x1b   :  { %s1263_s17 = scalar_lea.vmem %s25_s28, 256  ;;  %p1268_p12 = scmp.lt.s32.totalorder %s25_s28, %s25_s28 }
  0x1c   :  { %p1264_p11 = scmp.ne.s32.totalorder %s25_s28, %s1263_s17  ;;  %p1269_p13 = scmp.lt.s32.totalorder %s1263_s17, %s1263_s17 }
  0x1e   :  { %p1270_p0 = por %p1269_p13, %p1268_p12 }
  0x20   :  { %p1271_p1 = pnand %p1270_p0, %p1264_p11 }
  0x22   :  { %1274 = shalt.err (!%p1271_p1)
}
  0x23   :  { %s1353_s1 = smov 128   ;;  %s1354_s14 = smov 8  }
  0x24   :  { %30 = dma.hbm_to_vmem [thread:$0]  %s1586_s0, 256, %s25_s28, [#allocation3], %s1353_s1, %s1353_s1, %s1354_s14  }
  0x25   :  { %s1355_s20 = smov [#allocation7]   ;;  %s1356_s22 = smov [#allocation8]  }
  0x26   :  { %s52_s21 = sshll.u32 %s1355_s20, 4  ;;  %s68_s23 = sshll.u32 %s1356_s22, 4  ;;  %s53_s21 = int_to_ptr.vmem [resolvable:$true] %s52_s21  ;;  %s1441_s23 = int_to_ptr.vmem [resolvable:$true] %s68_s23 }
  0x27   :  { %s1275_s26 = scalar_lea.hbm %s1590_s4, 2048 }
  0x28   :  { %p1276_p2 = scmp.ne.s32.totalorder %s1590_s4, %s1275_s26  ;;  %p1279_p3 = scmp.lt.u32.totalorder %s1275_s26, %s1590_s4 }
  0x2a   :  { %p1281_p4 = pnand %p1279_p3, %p1276_p2 }
  0x2c   :  { %1284 = shalt.err (!%p1281_p4)
}
  0x2d   :  { %s1285_s0 = scalar_lea.vmem %s53_s21, 2048  ;;  %p1290_p6 = scmp.lt.s32.totalorder %s53_s21, %s53_s21 }
  0x2e   :  { %p1286_p5 = scmp.ne.s32.totalorder %s53_s21, %s1285_s0  ;;  %p1291_p7 = scmp.lt.s32.totalorder %s1285_s0, %s1285_s0 }
  0x30   :  { %p1292_p8 = por %p1291_p7, %p1290_p6 }
  0x32   :  { %p1293_p9 = pnand %p1292_p8, %p1286_p5 }
  0x34   :  { %1296 = shalt.err (!%p1293_p9)
}
  0x35   :  { %58 = dma.hbm_to_vmem [thread:$0]  %s1590_s4, 2048, %s53_s21, [#allocation6], %s1353_s1, %s1353_s1, %s1354_s14  }
  0x36   :  { %s1297_s16 = scalar_lea.hbm %s1593_s7, 2048 }
  0x37   :  { %p1298_p10 = scmp.ne.s32.totalorder %s1593_s7, %s1297_s16  ;;  %p1301_p11 = scmp.lt.u32.totalorder %s1297_s16, %s1593_s7 }
  0x39   :  { %p1303_p12 = pnand %p1301_p11, %p1298_p10 }
  0x3b   :  { %1306 = shalt.err (!%p1303_p12)
}
  0x3c   :  { %s1307_s22 = scalar_lea.vmem %s1441_s23, 2048  ;;  %p1312_p0 = scmp.lt.s32.totalorder %s1441_s23, %s1441_s23 }
  0x3d   :  { %p1308_p13 = scmp.ne.s32.totalorder %s1441_s23, %s1307_s22  ;;  %p1313_p1 = scmp.lt.s32.totalorder %s1307_s22, %s1307_s22 }
  0x3f   :  { %p1314_p2 = por %p1313_p1, %p1312_p0 }
  0x41   :  { %p1315_p3 = pnand %p1314_p2, %p1308_p13 }
  0x43   :  { %1318 = shalt.err (!%p1315_p3)
}
  0x44   :  { %74 = dma.hbm_to_vmem [thread:$0]  %s1593_s7, 2048, %s1441_s23, [#allocation9], %s1353_s1, %s1353_s1, %s1354_s14  }
  0x45   :  { %1341 = dma.done.wait [#allocation3], 256  }
  0x46   :  { %1342 = vsyncadd [#allocation3], 4294967040 }
  0x47   :  { %1343 = dma.done.wait [#allocation6], 8192  }
  0x48   :  { %1344 = vsyncadd [#allocation6], 4294959104 }
  0x49   :  { %1345 = dma.done.wait [#allocation9], 2048  }
  0x4a   :  { %1346 = vsyncadd [#allocation9], 4294965248  ;;  %v1104_v0 = vld [vmem:[#allocation5 + $0x4] ss:$12 sps:$4 sm:$0xff]   ;;  %v1106_v1 = vld [vmem:[#allocation5] ss:$12 sps:$4 sm:$0xff]   ;;  %v160_v50 = vlaneseq }
  0x4b   :  { %441 = vmatprep.subr.bf16.mxu0 %v1104_v0  ;;  %v1107_v2 = vld [vmem:[#allocation5 + $0x1c] ss:$12 sps:$4 sm:$0xff]   ;;  %v1109_v3 = vld [vmem:[#allocation5 + $0x18] ss:$12 sps:$4 sm:$0xff]   ;;  %v1110_v4 = vld [vmem:[#allocation5 + $0x34] ss:$12 sps:$4 sm:$0xff]  }
  0x4c   :  { %442 = vmatpush1.bf16.msra.mxu0 %v1106_v1  ;;  %v1112_v5 = vld [vmem:[#allocation5 + $0x30] ss:$12 sps:$4 sm:$0xff]   ;;  %v1113_v6 = vld [vmem:[#allocation5 + $0x4c] ss:$12 sps:$4 sm:$0xff]   ;;  %v1115_v7 = vld [vmem:[#allocation5 + $0x48] ss:$12 sps:$4 sm:$0xff]  }
  0x4d   :  { %443 = vmatprep.subr.bf16.mxu0 %v1107_v2  ;;  %v1116_v8 = vld [vmem:[#allocation5 + $0x64] ss:$12 sps:$4 sm:$0xff]   ;;  %v1118_v9 = vld [vmem:[#allocation5 + $0x60] ss:$12 sps:$4 sm:$0xff]   ;;  %v1119_v10 = vld [vmem:[#allocation5 + $0x7c] ss:$12 sps:$4 sm:$0xff]  }
  0x4e   :  { %v1121_v11 = vld [vmem:[#allocation5 + $0x78] ss:$12 sps:$4 sm:$0xff]   ;;  %v1122_v12 = vld [vmem:[#allocation5 + $0x94] ss:$12 sps:$4 sm:$0xff]   ;;  %v1124_v13 = vld [vmem:[#allocation5 + $0x90] ss:$12 sps:$4 sm:$0xff]  }
  0x4f   :  { %v1125_v14 = vld [vmem:[#allocation5 + $0xac] ss:$12 sps:$4 sm:$0xff]   ;;  %v1154_v15 = vld [vmem:[#allocation2 + $0x4] ss:$8 sps:$4 sm:$0xff]   ;;  %v1128_v17 = vld [vmem:[#allocation5 + $0xc4] ss:$12 sps:$4 sm:$0xff]  }
  0x50   :  { %444 = vmatpush1.bf16.msra.mxu0 %v1109_v3  ;;  %473 = vmatprep.mubr.bf16.mxu0 %v1154_v15  ;;  %v1127_v16 = vld [vmem:[#allocation5 + $0xa8] ss:$12 sps:$4 sm:$0xff]   ;;  %v1130_v18 = vld [vmem:[#allocation5 + $0xc0] ss:$12 sps:$4 sm:$0xff]   ;;  %v1133_v20 = vld [vmem:[#allocation5 + $0xd8] ss:$12 sps:$4 sm:$0xff]  }
  0x51   :  { %445 = vmatprep.subr.bf16.mxu0 %v1110_v4  ;;  %516 = vmatprep.mubr.bf16.mxu1 %v1154_v15  ;;  %v1131_v19 = vld [vmem:[#allocation5 + $0xdc] ss:$12 sps:$4 sm:$0xff]   ;;  %v1134_v21 = vld [vmem:[#allocation5 + $0xf4] ss:$12 sps:$4 sm:$0xff]   ;;  %v1137_v23 = vld [vmem:[#allocation5 + $0x10c] ss:$12 sps:$4 sm:$0xff]  }
  0x52   :  { %v1136_v22 = vld [vmem:[#allocation5 + $0xf0] ss:$12 sps:$4 sm:$0xff]   ;;  %v1139_v24 = vld [vmem:[#allocation5 + $0x108] ss:$12 sps:$4 sm:$0xff]   ;;  %v1142_v26 = vld [vmem:[#allocation5 + $0x120] ss:$12 sps:$4 sm:$0xff]  }
  0x53   :  { %v1140_v25 = vld [vmem:[#allocation5 + $0x124] ss:$12 sps:$4 sm:$0xff]   ;;  %v1143_v27 = vld [vmem:[#allocation5 + $0x13c] ss:$12 sps:$4 sm:$0xff]   ;;  %v1146_v29 = vld [vmem:[#allocation5 + $0x154] ss:$12 sps:$4 sm:$0xff]  }
  0x54   :  { %446 = vmatpush1.bf16.msra.mxu0 %v1112_v5  ;;  %v1145_v28 = vld [vmem:[#allocation5 + $0x138] ss:$12 sps:$4 sm:$0xff]   ;;  %v1148_v30 = vld [vmem:[#allocation5 + $0x150] ss:$12 sps:$4 sm:$0xff]   ;;  %v1151_v32 = vld [vmem:[#allocation5 + $0x168] ss:$12 sps:$4 sm:$0xff]  }
  0x55   :  { %447 = vmatprep.subr.bf16.mxu0 %v1113_v6  ;;  %v1149_v31 = vld [vmem:[#allocation5 + $0x16c] ss:$12 sps:$4 sm:$0xff]   ;;  %v1155_v34 = vld [vmem:[#allocation5 + $0xc8] ss:$12 sps:$4 sm:$0xff]   ;;  %v1161_v40 = vld [vmem:[#allocation5 + $0x110] ss:$12 sps:$4 sm:$0xff]  }
  0x56   :  { %v1152_v33 = vld [vmem:[#allocation2] ss:$8 sps:$4 sm:$0xff]   ;;  %v1156_v35 = vld [vmem:[#allocation5 + $0x8] ss:$12 sps:$4 sm:$0xff]   ;;  %v1157_v36 = vld [vmem:[#allocation5 + $0xe0] ss:$12 sps:$4 sm:$0xff]   ;;  %1072 = vmatprep.subr.bf16.mxu1 %v1155_v34 }
  0x57   :  { %1073 = vmatpush3.bf16.msra.mxu1 %v1156_v35  ;;  %v1158_v37 = vld [vmem:[#allocation5 + $0x20] ss:$12 sps:$4 sm:$0xff]   ;;  %v1159_v38 = vld [vmem:[#allocation5 + $0xf8] ss:$12 sps:$4 sm:$0xff]   ;;  %v1162_v41 = vld [vmem:[#allocation5 + $0x50] ss:$12 sps:$4 sm:$0xff]  }
  0x58   :  { %448 = vmatpush1.bf16.msra.mxu0 %v1115_v7  ;;  %1074 = vmatprep.subr.bf16.mxu1 %v1157_v36  ;;  %v1160_v39 = vld [vmem:[#allocation5 + $0x38] ss:$12 sps:$4 sm:$0xff]   ;;  %v1163_v42 = vld [vmem:[#allocation5 + $0x128] ss:$12 sps:$4 sm:$0xff]   ;;  %v1165_v44 = vld [vmem:[#allocation5 + $0x140] ss:$12 sps:$4 sm:$0xff]  }
  0x59   :  { %449 = vmatprep.subr.bf16.mxu0 %v1116_v8  ;;  %v1164_v43 = vld [vmem:[#allocation5 + $0x68] ss:$12 sps:$4 sm:$0xff]   ;;  %v1166_v45 = vld [vmem:[#allocation5 + $0x80] ss:$12 sps:$4 sm:$0xff]   ;;  %v1167_v46 = vld [vmem:[#allocation5 + $0x158] ss:$12 sps:$4 sm:$0xff]  }
  0x5a   :  { %v1168_v47 = vld [vmem:[#allocation5 + $0x98] ss:$12 sps:$4 sm:$0xff]   ;;  %v1169_v48 = vld [vmem:[#allocation5 + $0x170] ss:$12 sps:$4 sm:$0xff]   ;;  %v1478_v51 = vshrl.u32 %v160_v50, 7  ;;  %s1358_s15 = smov [#allocation10]  }
  0x5b   :  { %1075 = vmatpush3.bf16.msra.mxu1 %v1158_v37  ;;  %v1170_v49 = vld [vmem:[#allocation5 + $0xb0] ss:$12 sps:$4 sm:$0xff]   ;;  %v1173_v63 = vld [vmem:[#allocation7 + $0x4] ss:$8 sps:$4 sm:$0xff]   ;;  %v1171_v0 = vld [vmem:[#allocation7] ss:$8 sps:$4 sm:$0xff]  }
  0x5c   :  { %450 = vmatpush1.bf16.msra.mxu0 %v1118_v9  ;;  %1076 = vmatprep.subr.bf16.mxu1 %v1159_v38  ;;  %v1481_v52 = vsub.s32 0, %v1478_v51  ;;  %v1486_v53 = vld [vmem:[%s1588_s2] sm:$0x7]  ;;  %v1176_v1 = vld [vmem:[#allocation7 + $0x14] ss:$8 sps:$4 sm:$0xff]   ;;  %s970_s16 = sshll.u32 %s1358_s15, 4  ;;  %s971_s16 = int_to_ptr.vmem [resolvable:$true] %s970_s16 }
  0x5d   :  { %451 = vmatprep.subr.bf16.mxu0 %v1119_v10  ;;  %v1174_v2 = vld [vmem:[#allocation7 + $0x10] ss:$8 sps:$4 sm:$0xff]   ;;  %v1179_v3 = vld [vmem:[#allocation7 + $0x24] ss:$8 sps:$4 sm:$0xff]   ;;  %v1177_v4 = vld [vmem:[#allocation7 + $0x20] ss:$8 sps:$4 sm:$0xff]   ;;  %p1324_p5 = scmp.lt.s32.totalorder %s971_s16, %s971_s16 }
  0x5e   :  { %v163_v54 = vrot.slane %v1486_v53, %v1481_v52  ;;  %v1182_v5 = vld [vmem:[#allocation7 + $0x34] ss:$8 sps:$4 sm:$0xff]   ;;  %v1180_v6 = vld [vmem:[#allocation7 + $0x30] ss:$8 sps:$4 sm:$0xff]   ;;  %v1185_v7 = vld [vmem:[#allocation7 + $0x44] ss:$8 sps:$4 sm:$0xff]  }
  0x5f   :  { %1077 = vmatpush3.bf16.msra.mxu1 %v1160_v39  ;;  %v1183_v8 = vld [vmem:[#allocation7 + $0x40] ss:$8 sps:$4 sm:$0xff]   ;;  %v1188_v9 = vld [vmem:[#allocation7 + $0x54] ss:$8 sps:$4 sm:$0xff]   ;;  %v1186_v10 = vld [vmem:[#allocation7 + $0x50] ss:$8 sps:$4 sm:$0xff]  }
  0x60   :  { %452 = vmatpush1.bf16.msra.mxu0 %v1121_v11  ;;  %1078 = vmatprep.subr.bf16.mxu1 %v1161_v40  ;;  %v1191_v11 = vld [vmem:[#allocation7 + $0x64] ss:$8 sps:$4 sm:$0xff]   ;;  %v1192_v15 = vld [vmem:[#allocation7 + $0x70] ss:$8 sps:$4 sm:$0xff]  }
  0x61   :  { %453 = vmatprep.subr.bf16.mxu0 %v1122_v12  ;;  %v1189_v12 = vld [vmem:[#allocation7 + $0x60] ss:$8 sps:$4 sm:$0xff]   ;;  %v1034_v38 = vld [vmem:[%s1589_s3] ss:$0 sm:$0xff]  ;;  %v1035_v40 = vld [vmem:[%s1589_s3 + $0x1] ss:$0 sm:$0xff] }
  0x63   :  { %1079 = vmatpush3.bf16.msra.mxu1 %v1162_v41  ;;  %v1516_v41 = vsub.s32 1, %v1478_v51 }
  0x64   :  { %454 = vmatpush1.bf16.msra.mxu0 %v1124_v13  ;;  %1080 = vmatprep.subr.bf16.mxu1 %v1163_v42  ;;  %v1194_v13 = vld [vmem:[#allocation7 + $0x74] ss:$8 sps:$4 sm:$0xff]  }
  0x65   :  { %455 = vmatprep.subr.bf16.mxu0 %v1125_v14  ;;  %v1357_v14 = vmov 0  }
  0x67   :  { %1081 = vmatpush3.bf16.msra.mxu1 %v1164_v43 }
  0x68   :  { %456 = vmatpush1.bf16.msra.mxu0 %v1127_v16  ;;  %1082 = vmatprep.subr.bf16.mxu1 %v1165_v44 }
  0x69   :  { %457 = vmatprep.subr.bf16.mxu0 %v1128_v17 }
  0x6b   :  { %1083 = vmatpush3.bf16.msra.mxu1 %v1166_v45 }
  0x6c   :  { %458 = vmatpush1.bf16.msra.mxu0 %v1130_v18  ;;  %1084 = vmatprep.subr.bf16.mxu1 %v1167_v46 }
  0x6d   :  { %459 = vmatprep.subr.bf16.mxu0 %v1131_v19 }
  0x6f   :  { %1085 = vmatpush3.bf16.msra.mxu1 %v1168_v47  ;;  %v167_v47 = vrot.slane %v1486_v53, %v1516_v41 }
  0x70   :  { %460 = vmatpush1.bf16.msra.mxu0 %v1133_v20  ;;  %1086 = vmatprep.subr.bf16.mxu1 %v1169_v48 }
  0x71   :  { %461 = vmatprep.subr.bf16.mxu0 %v1134_v21 }
  0x73   :  { %1087 = vmatpush3.bf16.msra.mxu1 %v1170_v49 }
  0x74   :  { %462 = vmatpush1.bf16.msra.mxu0 %v1136_v22  ;;  %678 = vmatprep.subr.bf16.mxu1 %v1173_v63 }
  0x75   :  { %463 = vmatprep.subr.bf16.mxu0 %v1137_v23 }
  0x76   :  { %517 = vmatmul.mubr.bf16.vlgmr.msra.gmra.mrb[0].mxu1 %v1152_v33 }
  0x77   :  { %679 = vmatpush1.bf16.msra.mxu1 %v1171_v0  ;;  %710 = vmatprep.mubr.bf16.mxu1 %v1357_v14 }
  0x78   :  { %464 = vmatpush1.bf16.msra.mxu0 %v1139_v24  ;;  %680 = vmatprep.subr.bf16.mxu1 %v1176_v1 }
  0x79   :  { %465 = vmatprep.subr.bf16.mxu0 %v1140_v25 }
  0x7b   :  { %681 = vmatpush1.bf16.msra.mxu1 %v1174_v2 }
  0x7c   :  { %466 = vmatpush1.bf16.msra.mxu0 %v1142_v26  ;;  %682 = vmatprep.subr.bf16.mxu1 %v1179_v3 }
  0x7d   :  { %467 = vmatprep.subr.bf16.mxu0 %v1143_v27 }
  0x7f   :  { %683 = vmatpush1.bf16.msra.mxu1 %v1177_v4 }
  0x80   :  { %468 = vmatpush1.bf16.msra.mxu0 %v1145_v28  ;;  %684 = vmatprep.subr.bf16.mxu1 %v1182_v5 }
  0x81   :  { %469 = vmatprep.subr.bf16.mxu0 %v1146_v29 }
  0x83   :  { %685 = vmatpush1.bf16.msra.mxu1 %v1180_v6  ;;  %v1197_v6 = vld [vmem:[#allocation8 + $0x4] ss:$8 sps:$4 sm:$0xff]  }
  0x84   :  { %470 = vmatpush1.bf16.msra.mxu0 %v1148_v30  ;;  %686 = vmatprep.subr.bf16.mxu1 %v1185_v7  ;;  %v1195_v7 = vld [vmem:[#allocation8] ss:$8 sps:$4 sm:$0xff]  }
  0x85   :  { %471 = vmatprep.subr.bf16.mxu0 %v1149_v31 }
  0x87   :  { %687 = vmatpush1.bf16.msra.mxu1 %v1183_v8  ;;  %v1200_v8 = vld [vmem:[#allocation8 + $0x14] ss:$8 sps:$4 sm:$0xff]  }
  0x88   :  { %472 = vmatpush1.bf16.msra.mxu0 %v1151_v32  ;;  %688 = vmatprep.subr.bf16.mxu1 %v1188_v9  ;;  %v1198_v9 = vld [vmem:[#allocation8 + $0x10] ss:$8 sps:$4 sm:$0xff]  }
  0x89   :  { %874 = vmatprep.subr.bf16.mxu0 %v1197_v6 }
  0x8b   :  { %474 = vmatmul.mubr.bf16.vlgmr.msra.gmra.mrb[0].mxu0 %v1152_v33  ;;  %689 = vmatpush1.bf16.msra.mxu1 %v1186_v10  ;;  %v1203_v10 = vld [vmem:[#allocation8 + $0x24] ss:$8 sps:$4 sm:$0xff]  }
  0x8c   :  { %690 = vmatprep.subr.bf16.mxu1 %v1191_v11  ;;  %906 = vmatprep.mubr.bf16.mxu0 %v1357_v14  ;;  %v1201_v11 = vld [vmem:[#allocation8 + $0x20] ss:$8 sps:$4 sm:$0xff]   ;;  %v1209_v14 = vld [vmem:[#allocation8 + $0x44] ss:$8 sps:$4 sm:$0xff]  }
  0x8d   :  { %875 = vmatpush1.bf16.msra.mxu0 %v1195_v7 }
  0x8e   :  { %876 = vmatprep.subr.bf16.mxu0 %v1200_v8 }
  0x8f   :  { %691 = vmatpush1.bf16.msra.mxu1 %v1189_v12  ;;  %v1206_v12 = vld [vmem:[#allocation8 + $0x34] ss:$8 sps:$4 sm:$0xff]  }
  0x90   :  { %692 = vmatprep.subr.bf16.mxu1 %v1194_v13  ;;  %v1204_v13 = vld [vmem:[#allocation8 + $0x30] ss:$8 sps:$4 sm:$0xff]  }
  0x91   :  { %877 = vmatpush1.bf16.msra.mxu0 %v1198_v9 }
  0x92   :  { %878 = vmatprep.subr.bf16.mxu0 %v1203_v10 }
  0x93   :  { %693 = vmatpush1.bf16.msra.mxu1 %v1192_v15  ;;  %v1207_v15 = vld [vmem:[#allocation8 + $0x40] ss:$8 sps:$4 sm:$0xff]  }
  0x95   :  { %879 = vmatpush1.bf16.msra.mxu0 %v1201_v11 }
  0x96   :  { %880 = vmatprep.subr.bf16.mxu0 %v1206_v12 }
  0x99   :  { %881 = vmatpush1.bf16.msra.mxu0 %v1204_v13 }
  0x9a   :  { %882 = vmatprep.subr.bf16.mxu0 %v1209_v14 }
  0x9d   :  { %883 = vmatpush1.bf16.msra.mxu0 %v1207_v15 }
 0x149   :  { %v1088_v16 = vpop.f32.mrb[0].mxu1 }
 0x14a   :  { %v1089_v17 = vpop.f32.mrb[1].mxu1 }
 0x14b   :  { %v1504_v18 = vadd.f32 %v1089_v17, %v1088_v16  ;;  %v1091_v19 = vpop.f32.mrb[2].mxu1  ;;  %v1212_v16 = vld [vmem:[#allocation8 + $0x54] ss:$8 sps:$4 sm:$0xff]   ;;  %v1210_v17 = vld [vmem:[#allocation8 + $0x50] ss:$8 sps:$4 sm:$0xff]  }
 0x14c   :  { %v1092_v20 = vpop.f32.mrb[3].mxu1  ;;  %884 = vmatprep.subr.bf16.mxu0 %v1212_v16 }
 0x14d   :  { %v1506_v21 = vadd.f32 %v1092_v20, %v1091_v19  ;;  %v1215_v19 = vld [vmem:[#allocation8 + $0x64] ss:$8 sps:$4 sm:$0xff]   ;;  %885 = vmatpush1.bf16.msra.mxu0 %v1210_v17  ;;  %v1213_v20 = vld [vmem:[#allocation8 + $0x60] ss:$8 sps:$4 sm:$0xff]  }
 0x14e   :  { %886 = vmatprep.subr.bf16.mxu0 %v1215_v19 }
 0x151   :  { %887 = vmatpush1.bf16.msra.mxu0 %v1213_v20 }
 0x15e   :  { %v475_v55 = vpop.f32.mrb[0].mxu0 }
 0x15f   :  { %v1490_v56 = vadd.f32 %v475_v55, %v163_v54  ;;  %v1492_v57 = vpop.f32.mrb[1].mxu0 }
 0x160   :  { %v479_v58 = vpop.f32.mrb[2].mxu0 }
 0x161   :  { %v1494_v59 = vadd.f32 %v479_v58, %v163_v54  ;;  %v1496_v60 = vpop.f32.mrb[3].mxu0  ;;  %527 = vadd.xlane.f32.xlu0 %v1490_v56  ;;  %v531_v61 = vmul.f32 %v1490_v56, %v1490_v56  ;;  %v478_v54 = vadd.f32 %v1492_v57, %v167_v47 }
 0x162   :  { %v482_v55 = vadd.f32 %v1496_v60, %v167_v47 }
 0x163   :  { %533 = vadd.xlane.f32.xlu1 %v531_v61  ;;  %v532_v62 = vmul.f32 %v1494_v59, %v1494_v59 }
 0x165   :  { %529 = vadd.xlane.f32.xlu0 %v1494_v59 }
 0x167   :  { %535 = vadd.xlane.f32.xlu1 %v532_v62 }
 0x1ee   :  { %v528_v22 = vpop.xlane.xlu0 %527 }
 0x1ef   :  { %v537_v23 = vmul.f32 0.0078125, %v528_v22  ;;  %v1218_v22 = vld [vmem:[#allocation8 + $0x74] ss:$8 sps:$4 sm:$0xff]  }
 0x1f0   :  { %v534_v24 = vpop.xlane.xlu1 %533  ;;  %888 = vmatprep.subr.bf16.mxu0 %v1218_v22 }
 0x1f1   :  { %v541_v25 = vmul.f32 %v537_v23, %v537_v23  ;;  %v539_v26 = vmul.f32 0.0078125, %v534_v24  ;;  %v545_v36 = vsub.f32 %v1490_v56, %v537_v23  ;;  %v1216_v23 = vld [vmem:[#allocation8 + $0x70] ss:$8 sps:$4 sm:$0xff]  }
 0x1f2   :  { %v530_v27 = vpop.xlane.xlu0 %529  ;;  %889 = vmatpush1.bf16.msra.mxu0 %v1216_v23 }
 0x1f3   :  { %v543_v28 = vsub.f32 %v539_v26, %v541_v25  ;;  %v538_v29 = vmul.f32 0.0078125, %v530_v27 }
 0x1f4   :  { %v536_v30 = vpop.xlane.xlu1 %535 }
 0x1f5   :  { %v547_v31 = vadd.f32 1e-05, %v543_v28  ;;  %v542_v32 = vmul.f32 %v538_v29, %v538_v29  ;;  %v540_v33 = vmul.f32 0.0078125, %v536_v30  ;;  %v546_v42 = vsub.f32 %v1494_v59, %v538_v29  ;;  %v1526_v59 = vld [vmem:[%s1591_s5] sm:$0x3] }
 0x1f6   :  { %v591_v63 = vrot.slane %v1526_v59, %v1481_v52 }
 0x1f7   :  { %1219 = vrsqrt.f32 %v547_v31  ;;  %v544_v34 = vsub.f32 %v540_v33, %v542_v32 }
 0x1f9   :  { %v548_v35 = vadd.f32 1e-05, %v544_v34 }
 0x1fb   :  { %1221 = vrsqrt.f32 %v548_v35 }
 0x201   :  { %v1220_v37 = vpop.eup %1219 }
 0x202   :  { %v551_v39 = vmul.f32 %v1220_v37, %v545_v36 }
 0x204   :  { %v557_v43 = vmul.f32 %v1034_v38, %v551_v39 }
 0x205   :  { %v1222_v44 = vpop.eup %1221 }
 0x206   :  { %v552_v45 = vmul.f32 %v1222_v44, %v546_v42  ;;  %v563_v46 = vadd.f32 %v1035_v40, %v557_v43 }
 0x208   :  { %v558_v48 = vmul.f32 %v1034_v38, %v552_v45  ;;  %v565_v50 = vmax.f32 %v563_v46, 0.0  ;;  %v1053_v45 = vld [vmem:[%s1592_s6 + $0x1] ss:$0 sm:$0xff] }
 0x20a   :  { %v564_v49 = vadd.f32 %v1035_v40, %v558_v48  ;;  %v567_v58 = vadd.f32 %v565_v50, %v478_v54  ;;  %v1052_v40 = vld [vmem:[%s1592_s6] ss:$0 sm:$0xff]  ;;  %v595_v48 = vrot.slane %v1526_v59, %v1516_v41 }
 0x20c   :  { %v566_v56 = vmax.f32 %v564_v49, 0.0 }
 0x20e   :  { %v568_v61 = vadd.f32 %v566_v56, %v482_v55 }
 0x210   :  { %v569_v62 = vpack.c.bf16 %v568_v61, %v567_v58 }
 0x212   :  { %711 = vmatmul.mubr.bf16.vlgmr.msra.gmra.mrb[4].mxu1 %v569_v62 }
 0x2e5   :  { %v712_v0 = vpop.f32.mrb[4].mxu1 }
 0x2e6   :  { %v1530_v1 = vadd.f32 %v712_v0, %v591_v63  ;;  %v1532_v2 = vpop.f32.mrb[5].mxu1 }
 0x2e7   :  { %v716_v57 = vpop.f32.mrb[6].mxu1  ;;  %v715_v56 = vadd.f32 %v1532_v2, %v595_v48 }
 0x2e8   :  { %v1534_v60 = vadd.f32 %v716_v57, %v591_v63  ;;  %v1536_v3 = vpop.f32.mrb[7].mxu1  ;;  %723 = vadd.xlane.f32.xlu0 %v1530_v1  ;;  %v727_v4 = vmul.f32 %v1530_v1, %v1530_v1 }
 0x2e9   :  { %v719_v58 = vadd.f32 %v1536_v3, %v595_v48 }
 0x2ea   :  { %725 = vadd.xlane.f32.xlu1 %v1534_v60  ;;  %v728_v5 = vmul.f32 %v1534_v60, %v1534_v60 }
 0x2ec   :  { %729 = vadd.xlane.f32.xlu0 %v727_v4 }
 0x2ee   :  { %731 = vadd.xlane.f32.xlu1 %v728_v5 }
 0x375   :  { %v724_v24 = vpop.xlane.xlu0 %723 }
 0x376   :  { %v733_v25 = vmul.f32 0.015625, %v724_v24 }
 0x377   :  { %v726_v26 = vpop.xlane.xlu1 %725 }
 0x378   :  { %v734_v27 = vmul.f32 0.015625, %v726_v26  ;;  %v737_v29 = vmul.f32 %v733_v25, %v733_v25  ;;  %v741_v38 = vsub.f32 %v1530_v1, %v733_v25  ;;  %v782_v1 = vld [vmem:[%s1594_s8] sm:$0x3]  ;;  %v170_v26 = vsub.s32 2, %v1478_v51 }
 0x379   :  { %v730_v28 = vpop.xlane.xlu0 %729  ;;  %v787_v57 = vrot.slane %v782_v1, %v1481_v52  ;;  %v1070_v25 = vld [vmem:[%s1595_s9] ss:$0 sm:$0xff] }
 0x37a   :  { %v735_v30 = vmul.f32 0.015625, %v730_v28  ;;  %v738_v32 = vmul.f32 %v734_v27, %v734_v27  ;;  %v742_v42 = vsub.f32 %v1534_v60, %v734_v27 }
 0x37b   :  { %v732_v31 = vpop.xlane.xlu1 %731 }
 0x37c   :  { %v739_v33 = vsub.f32 %v735_v30, %v737_v29  ;;  %v736_v34 = vmul.f32 0.015625, %v732_v31  ;;  %v1071_v30 = vld [vmem:[%s1595_s9 + $0x1] ss:$0 sm:$0xff]  ;;  %v791_v31 = vrot.slane %v782_v1, %v1516_v41  ;;  %s1319_s9 = scalar_lea.vmem %s971_s16, 256 }
 0x37d   :  { %p1320_p4 = scmp.ne.s32.totalorder %s971_s16, %s1319_s9  ;;  %p1325_p6 = scmp.lt.s32.totalorder %s1319_s9, %s1319_s9 }
 0x37e   :  { %v743_v35 = vadd.f32 1e-05, %v739_v33  ;;  %v740_v36 = vsub.f32 %v736_v34, %v738_v32  ;;  %v171_v34 = vrot.slane %v1486_v53, %v170_v26 }
 0x37f   :  { %p1326_p7 = por %p1325_p6, %p1324_p5 }
 0x380   :  { %1223 = vrsqrt.f32 %v743_v35  ;;  %v744_v37 = vadd.f32 1e-05, %v740_v36  ;;  %v519_v51 = vadd.f32 %v1504_v18, %v171_v34 }
 0x381   :  { %p1327_p8 = pnand %p1326_p7, %p1320_p4 }
 0x382   :  { %1225 = vrsqrt.f32 %v744_v37 }
 0x38a   :  { %v1224_v39 = vpop.eup %1223 }
 0x38b   :  { %v747_v43 = vmul.f32 %v1224_v39, %v741_v38 }
 0x38c   :  { %v1226_v44 = vpop.eup %1225 }
 0x38d   :  { %v748_v46 = vmul.f32 %v1226_v44, %v742_v42  ;;  %v753_v47 = vmul.f32 %v1052_v40, %v747_v43  ;;  %v522_v44 = vadd.f32 %v1506_v21, %v171_v34 }
 0x38f   :  { %v754_v49 = vmul.f32 %v1052_v40, %v748_v46  ;;  %v759_v50 = vadd.f32 %v1053_v45, %v753_v47 }
 0x391   :  { %v760_v54 = vadd.f32 %v1053_v45, %v754_v49  ;;  %v761_v55 = vmax.f32 %v759_v50, 0.0 }
 0x393   :  { %v762_v61 = vmax.f32 %v760_v54, 0.0  ;;  %v763_v62 = vadd.f32 %v761_v55, %v715_v56 }
 0x395   :  { %v764_v63 = vadd.f32 %v762_v61, %v719_v58 }
 0x397   :  { %v765_v0 = vpack.c.bf16 %v764_v63, %v763_v62 }
 0x399   :  { %907 = vmatmul.mubr.bf16.vlgmr.msra.gmra.mrb[4].mxu0 %v765_v0 }
 0x46c   :  { %v908_v59 = vpop.f32.mrb[4].mxu0 }
 0x46d   :  { %v909_v60 = vadd.f32 %v908_v59, %v787_v57  ;;  %v910_v4 = vpop.f32.mrb[5].mxu0 }
 0x46e   :  { %v912_v5 = vpop.f32.mrb[6].mxu0  ;;  %v911_v37 = vadd.f32 %v910_v4, %v791_v31 }
 0x46f   :  { %v913_v6 = vadd.f32 %v912_v5, %v787_v57  ;;  %v914_v7 = vpop.f32.mrb[7].mxu0  ;;  %919 = vadd.xlane.f32.xlu0 %v909_v60  ;;  %v923_v2 = vmul.f32 %v909_v60, %v909_v60 }
 0x470   :  { %v915_v40 = vadd.f32 %v914_v7, %v791_v31 }
 0x471   :  { %921 = vadd.xlane.f32.xlu1 %v913_v6  ;;  %v924_v3 = vmul.f32 %v913_v6, %v913_v6 }
 0x473   :  { %925 = vadd.xlane.f32.xlu0 %v923_v2 }
 0x475   :  { %927 = vadd.xlane.f32.xlu1 %v924_v3 }
 0x4fc   :  { %v920_v8 = vpop.xlane.xlu0 %919 }
 0x4fd   :  { %v929_v9 = vmul.f32 0.03125, %v920_v8 }
 0x4fe   :  { %v922_v10 = vpop.xlane.xlu1 %921 }
 0x4ff   :  { %v930_v11 = vmul.f32 0.03125, %v922_v10  ;;  %v933_v13 = vmul.f32 %v929_v9, %v929_v9  ;;  %v937_v23 = vsub.f32 %v909_v60, %v929_v9 }
 0x500   :  { %v926_v12 = vpop.xlane.xlu0 %925 }
 0x501   :  { %v931_v14 = vmul.f32 0.03125, %v926_v12  ;;  %v934_v15 = vmul.f32 %v930_v11, %v930_v11  ;;  %v938_v27 = vsub.f32 %v913_v6, %v930_v11 }
 0x502   :  { %v928_v52 = vpop.xlane.xlu1 %927 }
 0x503   :  { %v935_v16 = vsub.f32 %v931_v14, %v933_v13  ;;  %v932_v17 = vmul.f32 0.03125, %v928_v52 }
 0x505   :  { %v939_v19 = vadd.f32 1e-05, %v935_v16  ;;  %v936_v20 = vsub.f32 %v932_v17, %v934_v15 }
 0x507   :  { %1227 = vrsqrt.f32 %v939_v19  ;;  %v940_v22 = vadd.f32 1e-05, %v936_v20 }
 0x509   :  { %1229 = vrsqrt.f32 %v940_v22 }
 0x511   :  { %v1228_v24 = vpop.eup %1227 }
 0x512   :  { %v943_v28 = vmul.f32 %v1228_v24, %v937_v23 }
 0x513   :  { %v1230_v29 = vpop.eup %1229 }
 0x514   :  { %v944_v32 = vmul.f32 %v1230_v29, %v938_v27  ;;  %v949_v33 = vmul.f32 %v1070_v25, %v943_v28 }
 0x516   :  { %v950_v35 = vmul.f32 %v1070_v25, %v944_v32  ;;  %v955_v36 = vadd.f32 %v1071_v30, %v949_v33 }
 0x518   :  { %v956_v38 = vadd.f32 %v1071_v30, %v950_v35  ;;  %v957_v39 = vmax.f32 %v955_v36, 0.0 }
 0x51a   :  { %v958_v42 = vmax.f32 %v956_v38, 0.0  ;;  %v959_v43 = vadd.f32 %v957_v39, %v911_v37 }
 0x51c   :  { %v960_v45 = vadd.f32 %v958_v42, %v915_v40  ;;  %v961_v41 = vadd.f32 %v959_v43, %v519_v51 }
 0x51e   :  { %v962_v46 = vadd.f32 %v960_v45, %v522_v44  ;;  %963 = vst [vmem:[#allocation10] sm:$0xff] %v961_v41 }
 0x520   :  { %964 = vst [vmem:[#allocation10 + $0x8] sm:$0xff] %v962_v46 }
 0x521   :  { %1330 = shalt.err (!%p1327_p8)
}
 0x522   :  { %s1331_s19 = scalar_lea.hbm %s1596_s10, 256 }
 0x523   :  { %p1332_p9 = scmp.ne.s32.totalorder %s1596_s10, %s1331_s19  ;;  %p1335_p10 = scmp.lt.u32.totalorder %s1331_s19, %s1596_s10 }
 0x525   :  { %p1337_p11 = pnand %p1335_p10, %p1332_p9 }
 0x527   :  { %1340 = shalt.err (!%p1337_p11)
}
 0x528   :  { %976 = dma.vmem_to_hbm [thread:$0]  %s971_s16, 256, %s1596_s10, [#allocation4], %s1353_s1, %s1353_s1, %s1354_s14  }
 0x529   :  { %1347 = dma.done.wait [#allocation4], 256  }
 0x52a   :  { %1348 = vsyncadd [#allocation4], 4294967040 }
 0x52b   :  { %980 = vsyncpa [#allocation3], 1 }
 0x52c   :  { %981 = vsyncpa [#allocation6], 1 }
 0x52d   :  { %982 = vsyncpa [#allocation9], 1 }
 0x52e   :  { %983 = vsyncpa [#allocation4], 1 }

</bundles_post_ra>
